<compile_context>
chip_gen: v5e
topology: v5e:2x2
jax: 0.10.0
libtpu: 0.0.40
codegen_flags: <defaults>
</compile_context>

<pallas_src>
import jax
import jax.numpy as jnp
from jax.experimental import pallas as pl
from jax.experimental.pallas import tpu as pltpu


def _fused_multistage_kernel(x_ref, w_ref, p_ref, o_ref):
    """All encoder layers applied to one (TILE, H) slab, intermediates in VMEM.

    x_ref: (TILE, H) f32/bf16  - token encodings tile
    w_ref: (L, H, H) bf16      - stacked projection weights
    p_ref: (L, 3, H) f32       - stacked [bias; gamma; beta] per layer
    o_ref: (TILE, H)           - output tile (same dtype as input)
    """
    nr_layers = w_ref.shape[0]
    inv_h = jnp.float32(1.0 / x_ref.shape[-1])
    x0 = x_ref[...].astype(jnp.float32)                       # (TILE, H)

    def layer_step(layer, x):
        w = w_ref[layer]                                       # (H, H) bf16
        p = p_ref[layer]                                       # (3, H) f32
        b = p[0:1, :]
        gamma = p[1:2, :]
        beta = p[2:3, :]

        # Projection on the MXU: bf16 operands, f32 accumulation.
        h = jnp.dot(x.astype(jnp.bfloat16), w,
                    preferred_element_type=jnp.float32)        # (TILE, H)

        # bias + activation_fn='relu'  (f32 VPU math)
        h = jnp.maximum(h + b, 0.0)

        # residual + LayerNorm (two-pass centered variance; eps matches torch)
        y = x + h
        mean = jnp.sum(y, axis=-1, keepdims=True) * inv_h
        yc = y - mean
        var = jnp.sum(yc * yc, axis=-1, keepdims=True) * inv_h
        return yc * jax.lax.rsqrt(var + 1e-5) * gamma + beta

    if nr_layers <= 4:
        # Small L: unroll at trace time (best LLO scheduling visibility).
        x = x0
        for layer in range(nr_layers):
            x = layer_step(layer, x)
    else:
        # Large L: bound live ranges / VMEM temporaries per iteration.
        x = jax.lax.fori_loop(0, nr_layers, layer_step, x0)

    o_ref[...] = x.astype(o_ref.dtype)


def _pick_tile(rows, tm):
    """Sublane-aligned row tile, capped so there are >=2 grid steps (v7x 2 TCs)."""
    rows_up8 = ((rows + 7) // 8) * 8
    half = max(8, ((rows_up8 + 15) // 16) * 8)     # ~ceil(rows/2), 8-aligned
    return max(8, min((tm // 8) * 8, half))


def code_expression_multistage_encoder(token_encodings, layer_params, *, tm=2048):
    """Chain `nr_layers` encoder layers (the Multistage encoder forward).

    token_encodings: [num_expressions, seq_len, hidden] f32 or bf16
    layer_params: list of (W[H,H], b[1,H], gamma[1,H], beta[1,H]) per layer.
    """
    n_expr, seq_len, hidden = token_encodings.shape
    assert hidden % 128 == 0, "hidden dim must be lane-aligned (multiple of 128)"
    rows = n_expr * seq_len
    x = token_encodings.reshape(rows, hidden)

    # Stack per-layer parameters: weights in bf16 (MXU operands), rest f32.
    w_stack = jnp.stack([w for (w, _, _, _) in layer_params]).astype(jnp.bfloat16)
    p_stack = jnp.stack(
        [jnp.concatenate([b, g, bt], axis=0)
         for (_, b, g, bt) in layer_params]).astype(jnp.float32)       # (L, 3, H)
    nr_layers = w_stack.shape[0]

    tile = _pick_tile(rows, tm)
    grid = (pl.cdiv(rows, tile),)          # partial last block masked by Pallas

    out = pl.pallas_call(
        _fused_multistage_kernel,
        out_shape=jax.ShapeDtypeStruct((rows, hidden), token_encodings.dtype),
        grid_spec=pltpu.PrefetchScalarGridSpec(
            num_scalar_prefetch=0,
            grid=grid,
            in_specs=[
                pl.BlockSpec((tile, hidden), lambda i: (i, 0)),           # x tile
                pl.BlockSpec((nr_layers, hidden, hidden),
                             lambda i: (0, 0, 0)),                        # W stack (resident)
                pl.BlockSpec((nr_layers, 3, hidden),
                             lambda i: (0, 0, 0)),                        # b/gamma/beta stack
            ],
            out_specs=pl.BlockSpec((tile, hidden), lambda i: (i, 0)),
        ),
        compiler_params=pltpu.CompilerParams(
            dimension_semantics=("parallel",),
            vmem_limit_bytes=32 * 1024 * 1024),   # explicit: v5e scoped default is 16 MiB
    )(x, w_stack, p_stack)

    return out.reshape(n_expr, seq_len, hidden)


def _reference(token_encodings, layer_params):
    """Pure-JAX reference with the same bf16-operand matmul as the kernel."""
    n_expr, seq_len, hidden = token_encodings.shape
    x = token_encodings.reshape(-1, hidden).astype(jnp.float32)
    for (w, b, g, bt) in layer_params:
        h = jnp.dot(x.astype(jnp.bfloat16), w.astype(jnp.bfloat16),
                    preferred_element_type=jnp.float32)
        h = jnp.maximum(h + b, 0.0)
        y = x + h
        mean = jnp.mean(y, axis=-1, keepdims=True)
        var = jnp.mean((y - mean) ** 2, axis=-1, keepdims=True)
        x = (y - mean) * jax.lax.rsqrt(var + 1e-5) * g + bt
    return x.reshape(n_expr, seq_len, hidden)


def _init_layer_params(key, hidden):
    kw, kg = jax.random.split(key)
    w = (jax.random.normal(kw, (hidden, hidden), jnp.float32)
         / jnp.sqrt(jnp.float32(hidden)))
    b = jnp.zeros((1, hidden), jnp.float32)
    gamma = jnp.ones((1, hidden), jnp.float32) + 0.01 * jax.random.normal(
        kg, (1, hidden), jnp.float32)
    beta = jnp.zeros((1, hidden), jnp.float32)
    return w, b, gamma, beta


def _run_case(key, num_expressions, seq_len, hidden, nr_layers):
    k_x, *k_layers = jax.random.split(key, 1 + nr_layers)
    token_encodings = jax.random.normal(
        k_x, (num_expressions, seq_len, hidden), jnp.float32)
    layer_params = [_init_layer_params(k, hidden) for k in k_layers]

    out = code_expression_multistage_encoder(token_encodings, layer_params)
    out = jax.block_until_ready(out)

    assert out.shape == (num_expressions, seq_len, hidden)
    assert out.dtype == jnp.float32
    assert bool(jnp.all(jnp.isfinite(out)))

    ref = _reference(token_encodings, layer_params)
    assert bool(jnp.allclose(out, ref, atol=2e-3, rtol=2e-3))


if __name__ == "__main__":
    # Small deterministic examples consistent with the module's forward:
    # previous_code_expression_encodings.token_seqs : [num_expressions, seq, hidden]
    key = jax.random.PRNGKey(0)
    k0, k1, k2 = jax.random.split(key, 3)

    # 1) canonical small case (unrolled layer loop), rows divide the tile
    _run_case(k0, num_expressions=4, seq_len=8, hidden=128, nr_layers=2)
    # 2) ragged row count -> exercises Pallas partial-last-block masking (no pad/slice)
    _run_case(k1, num_expressions=3, seq_len=5, hidden=128, nr_layers=2)
    # 3) deeper stack -> exercises the in-kernel fori_loop layer path
    _run_case(k2, num_expressions=4, seq_len=8, hidden=128, nr_layers=6)

    print("KERNEL_OK")
</pallas_src>

<mosaic_0001>
module attributes {stable_mosaic.version = 11 : i64} {
  func.func @_fused_multistage_kernel(%arg0: i32, %arg1: memref<16x128xf32, #tpu.memory_space<vmem>>, %arg2: memref<2x128x128xbf16, #tpu.memory_space<vmem>>, %arg3: memref<2x3x128xf32, #tpu.memory_space<vmem>>, %arg4: memref<16x128xf32, #tpu.memory_space<vmem>>) attributes {dimension_semantics = [#tpu.dimension_semantics<parallel>], iteration_bounds = array<i64: 2>, scalar_prefetch = 0 : i64, scratch_operands = 0 : i64, tpu.core_type = #tpu.core_type<tc>, window_params = [{transform_indices = @transform_0, window_bounds = array<i64: 16, 128>}, {pipeline_mode = #tpu.pipeline_mode<synchronous>, transform_indices = @transform_1, window_bounds = array<i64: 2, 128, 128>}, {pipeline_mode = #tpu.pipeline_mode<synchronous>, transform_indices = @transform_2, window_bounds = array<i64: 2, 3, 128>}, {transform_indices = @transform_3, window_bounds = array<i64: 16, 128>}]} {
    %c0 = arith.constant 0 : index
    %c0_0 = arith.constant 0 : index
    %0 = vector.load %arg1[%c0, %c0_0] : memref<16x128xf32, #tpu.memory_space<vmem>>, vector<16x128xf32>
    %c0_1 = arith.constant 0 : index
    %c0_2 = arith.constant 0 : index
    %c0_3 = arith.constant 0 : index
    %1 = vector.load %arg2[%c0_1, %c0_2, %c0_3] : memref<2x128x128xbf16, #tpu.memory_space<vmem>>, vector<1x128x128xbf16>
    %2 = vector.shape_cast %1 : vector<1x128x128xbf16> to vector<128x128xbf16>
    %c0_4 = arith.constant 0 : index
    %c0_5 = arith.constant 0 : index
    %c0_6 = arith.constant 0 : index
    %3 = vector.load %arg3[%c0_4, %c0_5, %c0_6] : memref<2x3x128xf32, #tpu.memory_space<vmem>>, vector<1x3x128xf32>
    %4 = vector.shape_cast %3 : vector<1x3x128xf32> to vector<3x128xf32>
    %5 = vector.extract_strided_slice %4 {offsets = [0, 0], sizes = [1, 128], strides = [1, 1]} : vector<3x128xf32> to vector<1x128xf32>
    %6 = vector.extract_strided_slice %4 {offsets = [1, 0], sizes = [1, 128], strides = [1, 1]} : vector<3x128xf32> to vector<1x128xf32>
    %7 = vector.extract_strided_slice %4 {offsets = [2, 0], sizes = [1, 128], strides = [1, 1]} : vector<3x128xf32> to vector<1x128xf32>
    %8 = arith.truncf %0 : vector<16x128xf32> to vector<16x128xbf16>
    %cst = arith.constant dense<0.000000e+00> : vector<16x128xf32>
    %9 = tpu.matmul %8, %2, %cst {dimension_numbers = #tpu.dot_dimension_numbers<[1], [0], [0], [1], [0, 0, 1, 1], [], []>} : vector<16x128xbf16>, vector<128x128xbf16>, vector<16x128xf32> -> vector<16x128xf32>
    %10 = vector.broadcast %5 : vector<1x128xf32> to vector<16x128xf32>
    %11 = arith.addf %9, %10 : vector<16x128xf32>
    %cst_7 = arith.constant 0.000000e+00 : f32
    %12 = vector.broadcast %cst_7 : f32 to vector<16x128xf32>
    %13 = arith.maximumf %11, %12 : vector<16x128xf32>
    %14 = arith.addf %0, %13 : vector<16x128xf32>
    %cst_8 = arith.constant dense<0.000000e+00> : vector<16xf32>
    %15 = vector.multi_reduction <add>, %14, %cst_8 [1] : vector<16x128xf32> to vector<16xf32>
    %16 = vector.shape_cast %15 : vector<16xf32> to vector<16x1xf32>
    %cst_9 = arith.constant 7.812500e-03 : f32
    %17 = vector.broadcast %cst_9 : f32 to vector<16x1xf32>
    %18 = arith.mulf %16, %17 : vector<16x1xf32>
    %19 = vector.broadcast %18 : vector<16x1xf32> to vector<16x128xf32>
    %20 = arith.subf %14, %19 : vector<16x128xf32>
    %21 = arith.mulf %20, %20 : vector<16x128xf32>
    %cst_10 = arith.constant dense<0.000000e+00> : vector<16xf32>
    %22 = vector.multi_reduction <add>, %21, %cst_10 [1] : vector<16x128xf32> to vector<16xf32>
    %23 = vector.shape_cast %22 : vector<16xf32> to vector<16x1xf32>
    %cst_11 = arith.constant 7.812500e-03 : f32
    %24 = vector.broadcast %cst_11 : f32 to vector<16x1xf32>
    %25 = arith.mulf %23, %24 : vector<16x1xf32>
    %cst_12 = arith.constant 9.99999974E-6 : f32
    %26 = vector.broadcast %cst_12 : f32 to vector<16x1xf32>
    %27 = arith.addf %25, %26 : vector<16x1xf32>
    %28 = math.rsqrt %27 : vector<16x1xf32>
    %29 = vector.broadcast %28 : vector<16x1xf32> to vector<16x128xf32>
    %30 = arith.mulf %20, %29 : vector<16x128xf32>
    %31 = vector.broadcast %6 : vector<1x128xf32> to vector<16x128xf32>
    %32 = arith.mulf %30, %31 : vector<16x128xf32>
    %33 = vector.broadcast %7 : vector<1x128xf32> to vector<16x128xf32>
    %34 = arith.addf %32, %33 : vector<16x128xf32>
    %c1 = arith.constant 1 : index
    %c0_13 = arith.constant 0 : index
    %c0_14 = arith.constant 0 : index
    %35 = vector.load %arg2[%c1, %c0_13, %c0_14] : memref<2x128x128xbf16, #tpu.memory_space<vmem>>, vector<1x128x128xbf16>
    %36 = vector.shape_cast %35 : vector<1x128x128xbf16> to vector<128x128xbf16>
    %c1_15 = arith.constant 1 : index
    %c0_16 = arith.constant 0 : index
    %c0_17 = arith.constant 0 : index
    %37 = vector.load %arg3[%c1_15, %c0_16, %c0_17] : memref<2x3x128xf32, #tpu.memory_space<vmem>>, vector<1x3x128xf32>
    %38 = vector.shape_cast %37 : vector<1x3x128xf32> to vector<3x128xf32>
    %39 = vector.extract_strided_slice %38 {offsets = [0, 0], sizes = [1, 128], strides = [1, 1]} : vector<3x128xf32> to vector<1x128xf32>
    %40 = vector.extract_strided_slice %38 {offsets = [1, 0], sizes = [1, 128], strides = [1, 1]} : vector<3x128xf32> to vector<1x128xf32>
    %41 = vector.extract_strided_slice %38 {offsets = [2, 0], sizes = [1, 128], strides = [1, 1]} : vector<3x128xf32> to vector<1x128xf32>
    %42 = arith.truncf %34 : vector<16x128xf32> to vector<16x128xbf16>
    %cst_18 = arith.constant dense<0.000000e+00> : vector<16x128xf32>
    %43 = tpu.matmul %42, %36, %cst_18 {dimension_numbers = #tpu.dot_dimension_numbers<[1], [0], [0], [1], [0, 0, 1, 1], [], []>} : vector<16x128xbf16>, vector<128x128xbf16>, vector<16x128xf32> -> vector<16x128xf32>
    %44 = vector.broadcast %39 : vector<1x128xf32> to vector<16x128xf32>
    %45 = arith.addf %43, %44 : vector<16x128xf32>
    %cst_19 = arith.constant 0.000000e+00 : f32
    %46 = vector.broadcast %cst_19 : f32 to vector<16x128xf32>
    %47 = arith.maximumf %45, %46 : vector<16x128xf32>
    %48 = arith.addf %34, %47 : vector<16x128xf32>
    %cst_20 = arith.constant dense<0.000000e+00> : vector<16xf32>
    %49 = vector.multi_reduction <add>, %48, %cst_20 [1] : vector<16x128xf32> to vector<16xf32>
    %50 = vector.shape_cast %49 : vector<16xf32> to vector<16x1xf32>
    %cst_21 = arith.constant 7.812500e-03 : f32
    %51 = vector.broadcast %cst_21 : f32 to vector<16x1xf32>
    %52 = arith.mulf %50, %51 : vector<16x1xf32>
    %53 = vector.broadcast %52 : vector<16x1xf32> to vector<16x128xf32>
    %54 = arith.subf %48, %53 : vector<16x128xf32>
    %55 = arith.mulf %54, %54 : vector<16x128xf32>
    %cst_22 = arith.constant dense<0.000000e+00> : vector<16xf32>
    %56 = vector.multi_reduction <add>, %55, %cst_22 [1] : vector<16x128xf32> to vector<16xf32>
    %57 = vector.shape_cast %56 : vector<16xf32> to vector<16x1xf32>
    %cst_23 = arith.constant 7.812500e-03 : f32
    %58 = vector.broadcast %cst_23 : f32 to vector<16x1xf32>
    %59 = arith.mulf %57, %58 : vector<16x1xf32>
    %cst_24 = arith.constant 9.99999974E-6 : f32
    %60 = vector.broadcast %cst_24 : f32 to vector<16x1xf32>
    %61 = arith.addf %59, %60 : vector<16x1xf32>
    %62 = math.rsqrt %61 : vector<16x1xf32>
    %63 = vector.broadcast %62 : vector<16x1xf32> to vector<16x128xf32>
    %64 = arith.mulf %54, %63 : vector<16x128xf32>
    %65 = vector.broadcast %40 : vector<1x128xf32> to vector<16x128xf32>
    %66 = arith.mulf %64, %65 : vector<16x128xf32>
    %67 = vector.broadcast %41 : vector<1x128xf32> to vector<16x128xf32>
    %68 = arith.addf %66, %67 : vector<16x128xf32>
    %c0_25 = arith.constant 0 : index
    %c0_26 = arith.constant 0 : index
    %69 = vector.load %arg4[%c0_25, %c0_26] : memref<16x128xf32, #tpu.memory_space<vmem>>, vector<16x128xf32>
    tpu.vector_store %arg4[%c0_25, %c0_26], %68 {strides = array<i32>} : memref<16x128xf32, #tpu.memory_space<vmem>>, vector<16x128xf32>,
    return
  }
  func.func @transform_0(%arg0: i32) -> (i32, i32) {
    %c0_i32 = arith.constant 0 : i32
    %c0_i32_0 = arith.constant 0 : i32
    return %arg0, %c0_i32 : i32, i32
  }
  func.func @transform_1(%arg0: i32) -> (i32, i32, i32) {
    %c0_i32 = arith.constant 0 : i32
    %c0_i32_0 = arith.constant 0 : i32
    %c0_i32_1 = arith.constant 0 : i32
    %c0_i32_2 = arith.constant 0 : i32
    return %c0_i32, %c0_i32_0, %c0_i32_1 : i32, i32, i32
  }
  func.func @transform_2(%arg0: i32) -> (i32, i32, i32) {
    %c0_i32 = arith.constant 0 : i32
    %c0_i32_0 = arith.constant 0 : i32
    %c0_i32_1 = arith.constant 0 : i32
    %c0_i32_2 = arith.constant 0 : i32
    return %c0_i32, %c0_i32_0, %c0_i32_1 : i32, i32, i32
  }
  func.func @transform_3(%arg0: i32) -> (i32, i32) {
    %c0_i32 = arith.constant 0 : i32
    %c0_i32_0 = arith.constant 0 : i32
    return %arg0, %c0_i32 : i32, i32
  }
}

</mosaic_0001>

<bundles_post_ra>
// kernel: tpu_custom_call.1
= control target key start
LH: loop header
LB: loop body
LE: loop exit
PB: predicated region body
PF: predicated region fallthrough
CT: control target
= control target key end

     0   :  { %8 = vsyncpa [#allocation3], 0  ;;  %s1066_s0 = inlined_call_operand.hbm [shape: f32[32,128], index: 0, kind: input, shape index: {}]   ;;  %s1067_s1 = inlined_call_operand.hbm [shape: bf16[2,128,128], index: 1, kind: input, shape index: {}]   ;;  %s1068_s2 = inlined_call_operand.vmem [shape: f32[2,3,128], index: 2, kind: input, shape index: {}]   ;;  %s1069_s3 = inlined_call_operand.hbm [shape: f32[32,128], index: 3, kind: output, shape index: {}]  }
   0x1   :  { %10 = vsyncpa [#allocation3 + $0x1], 0 }
   0x2   :  { %11 = vsyncpa [#allocation6], 0 }
   0x3   :  { %12 = vsyncpa [#allocation4], 0 }
   0x4   :  { %14 = vsyncpa [#allocation4 + $0x1], 0  ;;  %s906_s12 = smov 0   ;;  %s908_s13 = smov 0  }
   0x5   :  { %s910_s14 = smov 0   ;;  %s912_s15 = smov 0  }
   0x6 LB: > { %s927_s16 = sadd.s32 4294967295, %s877_s15   ;;  %s577_s17 = sadd.s32 4294967294, %s877_s15   ;;  %s877_s15 = sphi %s912_s15, %s1079_s15   ;;  %s873_s14 = sphi %s910_s14, %s1078_s14   ;;  %s869_s13 = sphi %s908_s13, %s1077_s13   ;;  %s865_s12 = sphi %s906_s12, %s1076_s12  }
   0x7   : > { %p40_p0 = scmp.ne.s32.totalorder %s869_s13, %s865_s12  ;;  %p41_p1 = scmp.eq.s32.totalorder %s927_s16, 0 }
   0x8   : > { %p106_p2 = scmp.eq.s32.totalorder %s927_s16, 1  ;;  %p112_p3 = scmp.eq.s32.totalorder %s577_s17, 1 }
   0x9   : > { %p936_p4 = por %p41_p1, %p40_p0  ;;  %p578_p5 = scmp.ge.s32.totalorder %s877_s15, 1 }
   0xa   : > { %p941_p6 = por %p112_p3, %p40_p0  ;;  %p119_p7 = scmp.lt.s32.totalorder %s877_s15, 3 }
   0xb   : > { %s130_s22 = sshll.u32 %s1067_s1, 4  ;;  %s879_s24 = smov [#allocation5]   ;;  %s131_s22 = int_to_ptr.hbm [resolvable:$true] %s130_s22 }
   0xc   : > { %p949_p8 = pnand %p578_p5, %p119_p7  ;;  %s132_s25 = sshll.u32 %s879_s24, 4  ;;  %s133_s25 = int_to_ptr.vmem [resolvable:$true] %s132_s25 }
   0xd   : > { %s959_s26 = sadd.s32 1, %s877_s15   ;;  %s880_s27 = smov 64  }
   0xe   : > { %p684_p9 = pneg %p949_p8  ;;  %s881_s28 = smov 4  }
   0xf   : > { %s24_s29 = ssub.s32 %s877_s15, %s959_s26  ;;  %s27_s30 = sadd.s32 1, %s873_s14 }
  0x10   : > { %p685_p10 = pnand %p684_p9, %p41_p1  ;;  %p25_p12 = scmp.eq.s32.totalorder %s24_s29, 0 }
  0x11   : > { %p34_p13 = scmp.ne.s32.totalorder %s873_s14, %s869_s13  ;;  %p35_p0 = scmp.eq.s32.totalorder %s877_s15, 0 }
  0x12   : > { %687 = dma.hbm_to_vmem [thread:$0]  (!%p685_p10), %s131_s22, 2048, %s133_s25, [#allocation6], %s880_s27, %s880_s27, %s881_s28  }
  0x13   : > { %p697_p3 = scmp.lt.s32.totalorder %s877_s15, 2  ;;  %p36_p5 = por %p35_p0, %p34_p13 }
  0x14   : > { %s969_s4 = scalar_select %p25_p12, %s873_s14, %s27_s30  }
  0x15   : > { %p973_p7 = por %p106_p2, %p34_p13  ;;  %s149_s6 = sand.u32 1, %s873_s14  }
  0x16   : > { %s658_s7 = sshll.u32 %s877_s15, 4  ;;  %s581_s8 = sshll.u32 %s149_s6, 4 }
  0x17   : > { %s158_s11 = scalar_lea.hbm %s1066_s0, %s658_s7  ;;  %s153_s20 = scalar_lea.vmem [#allocation2], %s581_s8 }
  0x18   : > { %s159_s17 = sshll.u32 %s158_s11, 4  ;;  %s161_s21 = sshll.u32 %s153_s20, 4  ;;  %s160_s17 = int_to_ptr.hbm [resolvable:$true] %s159_s17  ;;  %s162_s21 = int_to_ptr.vmem [resolvable:$true] %s161_s21 }
  0x19   : > { %p984_p9 = pnand %p697_p3, %p36_p5  ;;  %s150_s24 = scalar_lea.sflag [#allocation3], %s149_s6 }
  0x1a   : > { %s777_s25 = sshra.s32 %s160_s17, 4  ;;  %s784_s30 = scalar_lea.hbm %s1066_s0, 32  ;;  %s778_s25 = int_to_ptr.hbm [resolvable:$true] %s777_s25 }
  0x1b   : > { %s779_s27 = scalar_lea.hbm %s778_s25, 16  ;;  %p781_p10 = pneg %p984_p9 }
  0x1c   : > { %p780_p2 = scmp.ne.s32.totalorder %s778_s25, %s779_s27  ;;  %p785_p0 = scmp.lt.s32.totalorder %s778_s25, %s1066_s0 }
  0x1d   : > { %p786_p3 = scmp.lt.s32.totalorder %s784_s30, %s779_s27 }
  0x1e   : > { %p782_p12 = pnand %p781_p10, %p780_p2 }
  0x1f   : > { %p787_p5 = por %p786_p3, %p785_p0 }
  0x20   : > { %p783_p13 = pneg %p782_p12 }
  0x22   : > { %p788_p11 = pnand %p787_p5, %p783_p13 }
  0x24   : > { %791 = shalt.err (!%p788_p11)
}
  0x25   : > { %s882_s6 = smov 128   ;;  %s883_s9 = smov 8  }
  0x26   : > { %691 = dma.hbm_to_vmem [thread:$0]  (!%p984_p9), %s160_s17, 256, %s162_s21, %s150_s24, %s882_s6, %s882_s6, %s883_s9  }
  0x27   : > { %173 = sbr.rel (%p949_p8) target bundleno = 897 (0x381), region = 32  ;;  %s1001_s10 = sand.u32 (!%p949_p8), 1, %s869_s13  }
  0x28   : > { %s585_s11 = sshll.u32 (!%p949_p8), %s1001_s10, 4  ;;  %s176_s20 = scalar_lea.sflag (!%p949_p8), [#allocation3], %s1001_s10 }
  0x29   : > { %s179_s25 = scalar_lea.vmem (!%p949_p8), [#allocation2], %s585_s11 }
  0x2c   : > { %852 = dma.done.wait (%p936_p4), %s176_s20, 256  }
  0x2d   : > { %854 = vsyncadd (%p936_p4), %s176_s20, 4294967040 }
  0x2e   : > { %856 = dma.done.wait (%p41_p1), [#allocation6], 2048  }
  0x2f   : > { %858 = vsyncadd (%p41_p1), [#allocation6], 4294965248  ;;  %v666_v0 = vld [vmem:[#allocation5 + $0x38] sm:$0xff]  ;;  %v665_v1 = vld [vmem:[#allocation5 + $0x30] sm:$0xff]  ;;  %s675_s22 = sshll.u32 %s927_s16, 4  ;;  %s207_s29 = scalar_lea.vmem [#allocation7], %s585_s11 }
  0x30   : > { %279 = vmatpush.bf16.msra.mxu0 %v666_v0  ;;  %v664_v2 = vld [vmem:[#allocation5 + $0x28] sm:$0xff]  ;;  %v663_v3 = vld [vmem:[#allocation5 + $0x20] sm:$0xff]  ;;  %v662_v4 = vld [vmem:[#allocation5 + $0x18] sm:$0xff]  ;;  %s490_s28 = scalar_lea.hbm %s1069_s3, %s675_s22  ;;  %s491_s30 = sshll.u32 %s207_s29, 4  ;;  %s492_s30 = int_to_ptr.vmem [resolvable:$true] %s491_s30 }
  0x31   : > { %v661_v5 = vld [vmem:[#allocation5 + $0x10] sm:$0xff]  ;;  %v660_v6 = vld [vmem:[#allocation5 + $0x8] sm:$0xff]  ;;  %v659_v7 = vld [vmem:[#allocation5] sm:$0xff]  ;;  %s493_s7 = sshll.u32 %s490_s28, 4  ;;  %s479_s16 = scalar_lea.sflag [#allocation4], %s1001_s10  ;;  %s494_s7 = int_to_ptr.hbm [resolvable:$true] %s493_s7 }
  0x32   : > { %v210_v8 = vld [vmem:[%s179_s25] sm:$0xff]  ;;  %v211_v9 = vld [vmem:[%s179_s25 + $0x8] sm:$0xff]  ;;  %s821_s8 = sshra.s32 %s494_s7, 4  ;;  %s827_s20 = scalar_lea.hbm %s1069_s3, 32  ;;  %s822_s8 = int_to_ptr.hbm [resolvable:$true] %s821_s8 }
  0x33   : > { %v229_v10 = vpack.c.bf16 %v211_v9, %v210_v8  ;;  %v1018_v11 = vld [vmem:[%s1068_s2] sm:$0x7]  ;;  %v674_v29 = vld [vmem:[#allocation5 + $0x78] sm:$0xff]  ;;  %v673_v30 = vld [vmem:[#allocation5 + $0x70] sm:$0xff]  ;;  %s823_s6 = scalar_lea.hbm %s822_s8, 16  ;;  %p828_p11 = scmp.lt.s32.totalorder %s822_s8, %s1069_s3 }
  0x34   : > { %280 = vmatpush.bf16.msra.mxu0 %v665_v1  ;;  %v230_v12 = vperm.slane %v1018_v11, 0  ;;  %412 = vmatpush.bf16.msra.mxu1 %v674_v29  ;;  %v672_v31 = vld [vmem:[#allocation5 + $0x68] sm:$0xff]  ;;  %v671_v32 = vld [vmem:[#allocation5 + $0x60] sm:$0xff]  ;;  %v670_v33 = vld [vmem:[#allocation5 + $0x58] sm:$0xff]  ;;  %v337_v55 = vperm.slane %v1018_v11, 1  ;;  %v340_v61 = vperm.slane %v1018_v11, 2  ;;  %p824_p1 = scmp.ne.s32.totalorder %s822_s8, %s823_s6  ;;  %p829_p9 = scmp.lt.s32.totalorder %s827_s20, %s823_s6 }
  0x35   : > { %v669_v34 = vld [vmem:[#allocation5 + $0x50] sm:$0xff]  ;;  %v668_v35 = vld [vmem:[#allocation5 + $0x48] sm:$0xff]  ;;  %v667_v37 = vld [vmem:[#allocation5 + $0x40] sm:$0xff] }
  0x36   : > { %p825_p4 = pnand %p824_p1, %p973_p7  ;;  %p830_p2 = por %p829_p9, %p828_p11 }
  0x38   : > { %281 = vmatpush.bf16.msra.mxu0 %v664_v2  ;;  %413 = vmatpush.bf16.msra.mxu1 %v673_v30  ;;  %v1026_v2 = vld [vmem:[%s1068_s2 + $0x4] sm:$0x7]  ;;  %p826_p8 = pneg %p825_p4 }
  0x3a   : > { %p831_p10 = pnand %p830_p2, %p826_p8 }
  0x3c   : > { %282 = vmatpush.bf16.msra.mxu0 %v663_v3  ;;  %414 = vmatpush.bf16.msra.mxu1 %v672_v31  ;;  %v363_v3 = vperm.slane %v1026_v2, 0 }
  0x40   : > { %283 = vmatpush.bf16.msra.mxu0 %v662_v4  ;;  %415 = vmatpush.bf16.msra.mxu1 %v671_v32 }
  0x44   : > { %284 = vmatpush.bf16.msra.mxu0 %v661_v5  ;;  %416 = vmatpush.bf16.msra.mxu1 %v670_v33 }
  0x48   : > { %285 = vmatpush.bf16.msra.mxu0 %v660_v6  ;;  %417 = vmatpush.bf16.msra.mxu1 %v669_v34  ;;  %v470_v34 = vperm.slane %v1026_v2, 1 }
  0x4c   : > { %286 = vmatpush.bf16.msra.mxu0 %v659_v7  ;;  %418 = vmatpush.bf16.msra.mxu1 %v668_v35 }
  0x4f   : > { %287 = vmatmul.bf16.vlgmr.msra.gmra.mxu0 %v229_v10 }
  0x50   : > { %419 = vmatpush.bf16.msra.mxu1 %v667_v37  ;;  %v473_v37 = vperm.slane %v1026_v2, 2 }
  0xcc   : > { %v288_v13 = vpop.f32.mrf.mxu0 }
  0xcd   : > { %v289_v14 = vadd.f32 %v288_v13, %v230_v12 }
  0xcf   : > { %v293_v15 = vmax.f32 %v289_v14, 0.0 }
  0xd1   : > { %v295_v16 = vadd.f32 %v293_v15, %v210_v8 }
  0xd3   : > { %297 = vadd.xlane.f32.xlu0 %v295_v16 }
  0xd4   : > { %v290_v17 = vpop.f32.mrf.mxu0 }
  0xd5   : > { %v291_v18 = vadd.f32 %v290_v17, %v230_v12 }
  0xd7   : > { %v294_v19 = vmax.f32 %v291_v18, 0.0 }
  0xd9   : > { %v296_v20 = vadd.f32 %v294_v19, %v211_v9 }
  0xdb   : > { %299 = vadd.xlane.f32.xlu0 %v296_v20 }
 0x146   : > { %v298_v21 = vpop.xlane.xlu0 %297 }
 0x147   : > { %v301_v22 = vmul.f32 0.0078125, %v298_v21 }
 0x149   : > { %v303_v23 = vsub.f32 %v295_v16, %v301_v22 }
 0x14b   : > { %v305_v24 = vmul.f32 %v303_v23, %v303_v23 }
 0x14d   : > { %307 = vadd.xlane.f32.xlu1 %v305_v24 }
 0x14e   : > { %v300_v25 = vpop.xlane.xlu0 %299 }
 0x14f   : > { %v302_v26 = vmul.f32 0.0078125, %v300_v25 }
 0x151   : > { %v304_v27 = vsub.f32 %v296_v20, %v302_v26 }
 0x153   : > { %v306_v28 = vmul.f32 %v304_v27, %v304_v27 }
 0x155   : > { %309 = vadd.xlane.f32.xlu1 %v306_v28 }
 0x1c0   : > { %v308_v36 = vpop.xlane.xlu1 %307 }
 0x1c1   : > { %v311_v38 = vmul.f32 0.0078125, %v308_v36 }
 0x1c3   : > { %v313_v39 = vadd.f32 1e-05, %v311_v38 }
 0x1c5   : > { %739 = vrsqrt.f32 %v313_v39  ;;  %vm321_vm1 = vweird.f32 %v313_v39 }
 0x1c8   : > { %v310_v40 = vpop.xlane.xlu1 %309 }
 0x1c9   : > { %v312_v41 = vmul.f32 0.0078125, %v310_v40 }
 0x1cb   : > { %v740_v42 = vpop.eup %739  ;;  %v314_v43 = vadd.f32 1e-05, %v312_v41 }
 0x1cc   : > { %v316_v44 = vmul.f32 %v740_v42, %v313_v39  ;;  %vm322_vm0 = vweird.f32 %v740_v42 }
 0x1cd   : > { %741 = vrsqrt.f32 %v314_v43  ;;  %vm323_vm2 = vmor %vm321_vm1, %vm322_vm0  ;;  %vm331_vm4 = vweird.f32 %v314_v43 }
 0x1ce   : > { %v317_v45 = vmul.f32 %v740_v42, %v316_v44 }
 0x1d0   : > { %v318_v46 = vmul.f32 0.5, %v317_v45 }
 0x1d2   : > { %v319_v47 = vsub.f32 1.5, %v318_v46 }
 0x1d3   : > { %v742_v48 = vpop.eup %741 }
 0x1d4   : > { %v320_v49 = vmul.f32 %v740_v42, %v319_v47  ;;  %v326_v50 = vmul.f32 %v742_v48, %v314_v43  ;;  %vm332_vm3 = vweird.f32 %v742_v48 }
 0x1d5   : > { %vm333_vm5 = vmor %vm331_vm4, %vm332_vm3 }
 0x1d6   : > { %v327_v51 = vmul.f32 %v742_v48, %v326_v50  ;;  %v324_v53 = vsel %vm323_vm2, %v740_v42, %v320_v49 }
 0x1d7   : > { %v335_v56 = vmul.f32 %v324_v53, %v303_v23 }
 0x1d8   : > { %v328_v52 = vmul.f32 0.5, %v327_v51 }
 0x1d9   : > { %v338_v60 = vmul.f32 %v337_v55, %v335_v56 }
 0x1da   : > { %v329_v54 = vsub.f32 1.5, %v328_v52 }
 0x1db   : > { %v341_v63 = vadd.f32 %v340_v61, %v338_v60 }
 0x1dc   : > { %v330_v57 = vmul.f32 %v742_v48, %v329_v54 }
 0x1de   : > { %v334_v58 = vsel %vm333_vm5, %v742_v48, %v330_v57 }
 0x1df   : > { %v336_v59 = vmul.f32 %v334_v58, %v304_v27 }
 0x1e1   : > { %v339_v62 = vmul.f32 %v337_v55, %v336_v59 }
 0x1e3   : > { %v342_v0 = vadd.f32 %v340_v61, %v339_v62 }
 0x1e5   : > { %v362_v1 = vpack.c.bf16 %v342_v0, %v341_v63 }
 0x1e7   : > { %420 = vmatmul.bf16.vlgmr.msra.gmra.mxu1 %v362_v1 }
 0x264   : > { %v421_v4 = vpop.f32.mrf.mxu1 }
 0x265   : > { %v422_v5 = vadd.f32 %v421_v4, %v363_v3 }
 0x267   : > { %v426_v6 = vmax.f32 %v422_v5, 0.0 }
 0x269   : > { %v428_v7 = vadd.f32 %v426_v6, %v341_v63 }
 0x26b   : > { %430 = vadd.xlane.f32.xlu2 %v428_v7 }
 0x26c   : > { %v423_v8 = vpop.f32.mrf.mxu1 }
 0x26d   : > { %v424_v9 = vadd.f32 %v423_v8, %v363_v3 }
 0x26f   : > { %v427_v10 = vmax.f32 %v424_v9, 0.0 }
 0x271   : > { %v429_v11 = vadd.f32 %v427_v10, %v342_v0 }
 0x273   : > { %432 = vadd.xlane.f32.xlu2 %v429_v11 }
 0x2de   : > { %v431_v12 = vpop.xlane.xlu2 %430 }
 0x2df   : > { %v434_v13 = vmul.f32 0.0078125, %v431_v12 }
 0x2e1   : > { %v436_v14 = vsub.f32 %v428_v7, %v434_v13 }
 0x2e3   : > { %v438_v15 = vmul.f32 %v436_v14, %v436_v14 }
 0x2e5   : > { %440 = vadd.xlane.f32.xlu0 %v438_v15 }
 0x2e6   : > { %v433_v16 = vpop.xlane.xlu2 %432 }
 0x2e7   : > { %v435_v17 = vmul.f32 0.0078125, %v433_v16 }
 0x2e9   : > { %v437_v18 = vsub.f32 %v429_v11, %v435_v17 }
 0x2eb   : > { %v439_v19 = vmul.f32 %v437_v18, %v437_v18 }
 0x2ed   : > { %442 = vadd.xlane.f32.xlu1 %v439_v19 }
 0x358   : > { %v441_v20 = vpop.xlane.xlu0 %440 }
 0x359   : > { %v444_v21 = vmul.f32 0.0078125, %v441_v20 }
 0x35b   : > { %v446_v22 = vadd.f32 1e-05, %v444_v21 }
 0x35d   : > { %743 = vrsqrt.f32 %v446_v22  ;;  %vm454_vm7 = vweird.f32 %v446_v22 }
 0x360   : > { %v443_v23 = vpop.xlane.xlu1 %442 }
 0x361   : > { %v445_v24 = vmul.f32 0.0078125, %v443_v23 }
 0x363   : > { %v744_v25 = vpop.eup %743  ;;  %v447_v26 = vadd.f32 1e-05, %v445_v24 }
 0x364   : > { %v449_v27 = vmul.f32 %v744_v25, %v446_v22  ;;  %vm455_vm6 = vweird.f32 %v744_v25 }
 0x365   : > { %745 = vrsqrt.f32 %v447_v26  ;;  %vm456_vm8 = vmor %vm454_vm7, %vm455_vm6  ;;  %vm464_vm10 = vweird.f32 %v447_v26 }
 0x366   : > { %v450_v28 = vmul.f32 %v744_v25, %v449_v27 }
 0x368   : > { %v451_v29 = vmul.f32 0.5, %v450_v28 }
 0x36a   : > { %v452_v30 = vsub.f32 1.5, %v451_v29 }
 0x36b   : > { %v746_v31 = vpop.eup %745 }
 0x36c   : > { %v453_v32 = vmul.f32 %v744_v25, %v452_v30  ;;  %v459_v33 = vmul.f32 %v746_v31, %v447_v26  ;;  %vm465_vm9 = vweird.f32 %v746_v31 }
 0x36d   : > { %vm466_vm11 = vmor %vm464_vm10, %vm465_vm9 }
 0x36e   : > { %v457_v35 = vsel %vm456_vm8, %v744_v25, %v453_v32  ;;  %v460_v36 = vmul.f32 %v746_v31, %v459_v33 }
 0x36f   : > { %v468_v38 = vmul.f32 %v457_v35, %v436_v14 }
 0x370   : > { %v461_v39 = vmul.f32 0.5, %v460_v36 }
 0x371   : > { %v471_v40 = vmul.f32 %v470_v34, %v468_v38 }
 0x372   : > { %v462_v41 = vsub.f32 1.5, %v461_v39 }
 0x373   : > { %v474_v42 = vadd.f32 %v473_v37, %v471_v40 }
 0x374   : > { %v463_v43 = vmul.f32 %v746_v31, %v462_v41 }
 0x375   : > { %476 = vst [vmem:[%s207_s29] sm:$0xff] %v474_v42 }
 0x376   : > { %v467_v44 = vsel %vm466_vm11, %v746_v31, %v463_v43 }
 0x377   : > { %v469_v45 = vmul.f32 %v467_v44, %v437_v18 }
 0x379   : > { %v472_v46 = vmul.f32 %v470_v34, %v469_v45 }
 0x37b   : > { %v475_v47 = vadd.f32 %v473_v37, %v472_v46 }
 0x37d   : > { %477 = vst [vmem:[%s207_s29 + $0x8] sm:$0xff] %v475_v47 }
 0x37e   : > { %834 = shalt.err (!%p831_p10)
}
 0x37f   : > { %s884_s10 = smov 128   ;;  %s885_s23 = smov 8  }
 0x380   : > { %682 = dma.vmem_to_hbm [thread:$0]  (%p973_p7), %s492_s30, 256, %s494_s7, %s479_s16, %s884_s10, %s884_s10, %s885_s23  }
 0x381 PF: > { %s508_s17 = sand.u32 1, %s865_s12   ;;  %p1075_p12 = scmp.ge.s32.totalorder %s877_s15, 2 }
 0x382   : > { %s509_s21 = scalar_lea.sflag [#allocation4], %s508_s17 }
 0x383   : > { %p693_p13 = pnand %p1075_p12, %p941_p6 }
 0x385   : > { %p694_p0 = pneg %p693_p13 }
 0x387   : > { %860 = dma.done.wait (%p694_p0), %s509_s21, 256  }
 0x388   : > { %862 = vsyncadd (%p694_p0), %s509_s21, 4294967040  ;;  %p17_p3 = scmp.ge.s32.totalorder %s959_s26, 4   ;;  %s1076_s12 = smov %s869_s13 }
 0x389   : > { %s1077_s13 = smov %s873_s14  ;;  %s1078_s14 = smov %s969_s4 }
 0x38a   : > { %s1079_s15 = smov %s959_s26  ;;  %19 = sbr.rel (!%p17_p3) target bundleno = 6 (0x6), region = 83 }
 0x38f   :  { %515 = vsyncpa [#allocation3], 1 }
 0x390   :  { %517 = vsyncpa [#allocation3 + $0x1], 1 }
 0x391   :  { %518 = vsyncpa [#allocation6], 1 }
 0x392   :  { %519 = vsyncpa [#allocation4], 1 }
 0x393   :  { %521 = vsyncpa [#allocation4 + $0x1], 1 }

</bundles_post_ra>
